<compile_context>
chip_gen: v5e
topology: v5e:2x2
jax: 0.10.0
libtpu: 0.0.40
codegen_flags: <defaults>
</compile_context>

<pallas_src>
import math
from functools import lru_cache

import jax
import jax.numpy as jnp
from jax.experimental import pallas as pl
from jax.experimental.pallas import tpu as pltpu

_INV_SQRT2 = 1.0 / math.sqrt(2.0)

# Flipped to True (once) if the tuned configuration fails to lower on this
# jax/libtpu combination; the fallback is the previously-validated config.
_SAFE_MODE = False


def _round_up(x, m):
    return ((x + m - 1) // m) * m


def _sublane(*dtypes):
    """Row granularity that keeps packed stores unmasked: 8 rows for 4-byte
    dtypes, 16 for 2-byte (bf16/f16), 32 for 1-byte (int8/fp8)."""
    need = 8
    for dt in dtypes:
        need = max(need, 8 * (4 // max(1, jnp.dtype(dt).itemsize)))
    return need


@lru_cache(maxsize=1)
def _chip_info():
    """Returns (num_tensorcores_sharing_grid, bf16_elementwise_ok, vmem_cap_bytes)."""
    try:
        kind = jax.devices()[0].device_kind.lower()
    except Exception:  # pragma: no cover - defensive
        kind = ""
    is_v7 = ("v7" in kind) or ("7x" in kind)
    is_v6 = "v6" in kind
    is_v5e = ("v5e" in kind) or ("v5 lite" in kind) or ("v5litepod" in kind)
    # Grid axes marked "parallel" shard across TensorCores only on megacore
    # parts (v4 / v5p / v7x); v5e and v6e are 1 TC per chip.
    multi_tc = is_v7 or ("v4" in kind) or ("v5p" in kind)
    # bf16 VPU/EUP exist on v6e/v7x; v5e has no bf16 VALU -> keep f32 there.
    ew_bf16 = is_v6 or is_v7
    if is_v7:
        vmem_cap = 56 * 1024 * 1024          # 64 MiB physical per TC on v7x
    elif is_v6 or is_v5e:
        vmem_cap = 100 * 1024 * 1024         # 128 MiB physical on v5e/v6e
    else:
        vmem_cap = 64 * 1024 * 1024          # conservative default
    return (2 if multi_tc else 1), ew_bf16, vmem_cap


def _transform_kernel(eps, matmul_dtype, ew_dtype):
    ew_is_f32 = jnp.dtype(ew_dtype) == jnp.dtype(jnp.float32)

    def kernel(x_ref, w_ref, b_ref, g_ref, beta_ref, o_ref):
        # Linear on the MXU: bf16 operands, f32 accumulation. W already (in, out).
        x = x_ref[...].astype(matmul_dtype)
        y = jnp.dot(x, w_ref[...], preferred_element_type=jnp.float32)
        y = y + b_ref[...].astype(jnp.float32)

        # erf-based GELU (matches torch.erf gelu exactly in math form).
        if ew_is_f32:
            y = y * 0.5 * (1.0 + jax.lax.erf(y * _INV_SQRT2))
        else:
            # bf16 elementwise on chips with a packed-bf16 VPU (v6e/v7x).
            ye = y.astype(ew_dtype)
            ye = (ye * jnp.asarray(0.5, ew_dtype)
                  * (jnp.asarray(1.0, ew_dtype)
                     + jax.lax.erf(ye * jnp.asarray(_INV_SQRT2, ew_dtype))))
            y = ye.astype(jnp.float32)

        # LayerNorm over the hidden (last) axis: one-pass biased variance in f32
        # (var = E[y^2] - E[y]^2, clamped at 0).  Within the module's tolerance;
        # switch to two-pass (y - mean)^2 if tolerances are ever tightened.
        mean = jnp.mean(y, axis=-1, keepdims=True)
        mean_sq = jnp.mean(y * y, axis=-1, keepdims=True)
        var = jnp.maximum(mean_sq - mean * mean, 0.0)
        y = (y - mean) * jax.lax.rsqrt(var + eps)

        if ew_is_f32:
            out = (y * g_ref[...].astype(jnp.float32)
                   + beta_ref[...].astype(jnp.float32))
        else:
            out = (y.astype(ew_dtype) * g_ref[...].astype(ew_dtype)
                   + beta_ref[...].astype(ew_dtype))
        o_ref[...] = out.astype(o_ref.dtype)

    return kernel


def prepare_transform_params(weight, bias, gamma, beta, matmul_dtype=jnp.bfloat16):
    """One-time parameter prep (do at load time, NOT in the per-call path).

    weight: (out, in) PyTorch nn.Linear layout.  Returns the weight transposed
    to (in, out) and cast to the MXU dtype; bias/gamma/beta stay f32, (1, H).
    """
    H = weight.shape[0]
    w_t = jnp.asarray(weight).T.astype(matmul_dtype)         # (in, out)
    b2 = jnp.asarray(bias, jnp.float32).reshape(1, H)
    g2 = jnp.asarray(gamma, jnp.float32).reshape(1, H)
    be2 = jnp.asarray(beta, jnp.float32).reshape(1, H)
    return w_t, b2, g2, be2


def bert_prediction_head_transform(x, w_t, bias2d, gamma2d, beta2d,
                                   *, eps=1e-12, tm=512):
    """x: (..., H). w_t: (H, H) ALREADY transposed to (in, out) (see
    prepare_transform_params). bias2d/gamma2d/beta2d: (1, H) float32."""
    global _SAFE_MODE

    orig_shape = x.shape
    H = orig_shape[-1]
    x2 = x.reshape(-1, H)
    M = x2.shape[0]
    out_dtype = x.dtype

    num_tc, ew_bf16, vmem_cap = _chip_info()
    sub = _sublane(x2.dtype, out_dtype)

    # Balanced row tiling: choose the number of tiles first (so padding never
    # approaches a full tile), then round each tile up to the sublane multiple.
    n_tiles = max(1, pl.cdiv(M, tm))
    if num_tc >= 2:
        # Keep an even number of grid steps so both TensorCores get equal work.
        if n_tiles == 1 and M > sub:
            n_tiles = 2
        elif n_tiles > 1 and n_tiles % 2 == 1:
            n_tiles += 1
    tm_eff = max(sub, _round_up(pl.cdiv(M, n_tiles), sub))
    M_pad = n_tiles * tm_eff
    if M_pad != M:
        x2 = jnp.pad(x2, ((0, M_pad - M), (0, 0)))   # masked tail via padding
    grid = (n_tiles,)

    def run(safe):
        ew_dtype = jnp.bfloat16 if (ew_bf16 and not safe) else jnp.float32
        it_x = jnp.dtype(x2.dtype).itemsize
        it_o = jnp.dtype(out_dtype).itemsize
        it_w = jnp.dtype(w_t.dtype).itemsize
        w_bufs = 2 if safe else 1                      # Buffered(1) when not safe

        # VMEM budget from the actual footprint: double-buffered streaming x/out
        # tiles, (single-buffered) resident weight + param rows, plus the f32
        # activation intermediate between the matmul and LayerNorm.
        vmem_est = (2 * tm_eff * H * it_x
                    + 2 * tm_eff * H * it_o
                    + w_bufs * H * H * it_w
                    + w_bufs * 3 * H * 4
                    + 2 * tm_eff * H * 4)
        vmem_limit = int(min(max(vmem_est + (8 << 20), 32 << 20), vmem_cap))

        if safe:
            def const_spec(shape):
                return pl.BlockSpec(shape, lambda i: (0, 0))
        else:
            def const_spec(shape):
                return pl.BlockSpec(shape, lambda i: (0, 0),
                                    pipeline_mode=pl.Buffered(1))

        return pl.pallas_call(
            _transform_kernel(eps, w_t.dtype, ew_dtype),
            out_shape=jax.ShapeDtypeStruct((M_pad, H), out_dtype),
            grid_spec=pltpu.PrefetchScalarGridSpec(
                num_scalar_prefetch=0,
                grid=grid,
                in_specs=[
                    pl.BlockSpec((tm_eff, H), lambda i: (i, 0)),  # x row tile (streams)
                    const_spec((H, H)),                           # weight (VMEM-resident)
                    const_spec((1, H)),                           # bias
                    const_spec((1, H)),                           # gamma
                    const_spec((1, H)),                           # beta
                ],
                out_specs=pl.BlockSpec((tm_eff, H), lambda i: (i, 0)),
            ),
            compiler_params=pltpu.CompilerParams(
                dimension_semantics=("parallel",),
                vmem_limit_bytes=vmem_limit),
        )(x2, w_t, bias2d, gamma2d, beta2d)

    if _SAFE_MODE:
        out = run(True)
    else:
        try:
            out = run(False)
        except Exception:
            # Fall back to the previously-validated configuration (double-buffered
            # constants, f32 elementwise) if the tuned config fails to lower.
            _SAFE_MODE = True
            out = run(True)

    out = out[:M]
    return out.reshape(orig_shape)


if __name__ == "__main__":
    # small shapes consistent with the module: (batch, seq, hidden)
    B, S, H = 2, 8, 128
    key = jax.random.PRNGKey(0)
    kx, kw, kb, kg, kbe = jax.random.split(key, 5)

    x = jax.random.normal(kx, (B, S, H), dtype=jnp.float32)
    # deterministic parameter init (shapes from nn.Linear(H, H) and LayerNorm(H))
    weight = jax.random.normal(kw, (H, H), dtype=jnp.float32) * 0.02  # (out, in)
    bias = jax.random.normal(kb, (H,), dtype=jnp.float32) * 0.02
    gamma = 1.0 + 0.1 * jax.random.normal(kg, (H,), dtype=jnp.float32)
    beta = 0.1 * jax.random.normal(kbe, (H,), dtype=jnp.float32)

    # one-time prep: transpose weight to (in, out) and cast to bf16 for the MXU
    w_t, b2, g2, be2 = prepare_transform_params(weight, bias, gamma, beta)

    out = bert_prediction_head_transform(x, w_t, b2, g2, be2, eps=1e-12)
    jax.block_until_ready(out)

    # pure-JAX f32 reference check (erf GELU, biased variance)
    y_ref = x @ weight.T + bias
    y_ref = y_ref * 0.5 * (1.0 + jax.lax.erf(y_ref / math.sqrt(2.0)))
    mu = jnp.mean(y_ref, axis=-1, keepdims=True)
    var = jnp.mean((y_ref - mu) ** 2, axis=-1, keepdims=True)
    y_ref = (y_ref - mu) / jnp.sqrt(var + 1e-12) * gamma + beta
    # bf16 MXU operands (and possibly bf16 elementwise on v6e/v7x) -> ~1e-2 deviation
    assert jnp.allclose(out, y_ref, atol=3e-2, rtol=3e-2), float(
        jnp.max(jnp.abs(out - y_ref)))

    print("KERNEL_OK")
</pallas_src>

<mosaic_0001>
module attributes {stable_mosaic.version = 11 : i64} {
  func.func @kernel(%arg0: i32, %arg1: memref<16x128xf32, #tpu.memory_space<vmem>>, %arg2: memref<128x128xbf16, #tpu.memory_space<vmem>>, %arg3: memref<1x128xf32, #tpu.memory_space<vmem>>, %arg4: memref<1x128xf32, #tpu.memory_space<vmem>>, %arg5: memref<1x128xf32, #tpu.memory_space<vmem>>, %arg6: memref<16x128xf32, #tpu.memory_space<vmem>>) attributes {dimension_semantics = [#tpu.dimension_semantics<parallel>], iteration_bounds = array<i64: 1>, scalar_prefetch = 0 : i64, scratch_operands = 0 : i64, tpu.core_type = #tpu.core_type<tc>, window_params = [{transform_indices = @transform_0, window_bounds = array<i64: 16, 128>}, {pipeline_mode = #tpu.pipeline_mode<synchronous>, transform_indices = @transform_1, window_bounds = array<i64: 128, 128>}, {pipeline_mode = #tpu.pipeline_mode<synchronous>, transform_indices = @transform_2, window_bounds = array<i64: 1, 128>}, {pipeline_mode = #tpu.pipeline_mode<synchronous>, transform_indices = @transform_3, window_bounds = array<i64: 1, 128>}, {pipeline_mode = #tpu.pipeline_mode<synchronous>, transform_indices = @transform_4, window_bounds = array<i64: 1, 128>}, {transform_indices = @transform_5, window_bounds = array<i64: 16, 128>}]} {
    %c0 = arith.constant 0 : index
    %c0_0 = arith.constant 0 : index
    %0 = vector.load %arg1[%c0, %c0_0] : memref<16x128xf32, #tpu.memory_space<vmem>>, vector<16x128xf32>
    %1 = arith.truncf %0 : vector<16x128xf32> to vector<16x128xbf16>
    %c0_1 = arith.constant 0 : index
    %c0_2 = arith.constant 0 : index
    %2 = vector.load %arg2[%c0_1, %c0_2] : memref<128x128xbf16, #tpu.memory_space<vmem>>, vector<128x128xbf16>
    %cst = arith.constant dense<0.000000e+00> : vector<16x128xf32>
    %3 = tpu.matmul %1, %2, %cst {dimension_numbers = #tpu.dot_dimension_numbers<[1], [0], [0], [1], [0, 0, 1, 1], [], []>} : vector<16x128xbf16>, vector<128x128xbf16>, vector<16x128xf32> -> vector<16x128xf32>
    %c0_3 = arith.constant 0 : index
    %c0_4 = arith.constant 0 : index
    %4 = vector.load %arg3[%c0_3, %c0_4] : memref<1x128xf32, #tpu.memory_space<vmem>>, vector<1x128xf32>
    %5 = vector.broadcast %4 : vector<1x128xf32> to vector<16x128xf32>
    %6 = arith.addf %3, %5 : vector<16x128xf32>
    %cst_5 = arith.constant 5.000000e-01 : f32
    %7 = vector.broadcast %cst_5 : f32 to vector<16x128xf32>
    %8 = arith.mulf %6, %7 : vector<16x128xf32>
    %cst_6 = arith.constant 0.707106769 : f32
    %9 = vector.broadcast %cst_6 : f32 to vector<16x128xf32>
    %10 = arith.mulf %6, %9 : vector<16x128xf32>
    %11 = math.erf %10 : vector<16x128xf32>
    %cst_7 = arith.constant 1.000000e+00 : f32
    %12 = vector.broadcast %cst_7 : f32 to vector<16x128xf32>
    %13 = arith.addf %12, %11 : vector<16x128xf32>
    %14 = arith.mulf %8, %13 : vector<16x128xf32>
    %cst_8 = arith.constant dense<0.000000e+00> : vector<16xf32>
    %15 = vector.multi_reduction <add>, %14, %cst_8 [1] : vector<16x128xf32> to vector<16xf32>
    %16 = vector.shape_cast %15 : vector<16xf32> to vector<16x1xf32>
    %cst_9 = arith.constant 1.280000e+02 : f32
    %17 = vector.broadcast %cst_9 : f32 to vector<16x1xf32>
    %18 = arith.divf %16, %17 : vector<16x1xf32>
    %19 = arith.mulf %14, %14 : vector<16x128xf32>
    %cst_10 = arith.constant dense<0.000000e+00> : vector<16xf32>
    %20 = vector.multi_reduction <add>, %19, %cst_10 [1] : vector<16x128xf32> to vector<16xf32>
    %21 = vector.shape_cast %20 : vector<16xf32> to vector<16x1xf32>
    %cst_11 = arith.constant 1.280000e+02 : f32
    %22 = vector.broadcast %cst_11 : f32 to vector<16x1xf32>
    %23 = arith.divf %21, %22 : vector<16x1xf32>
    %24 = arith.mulf %18, %18 : vector<16x1xf32>
    %25 = arith.subf %23, %24 : vector<16x1xf32>
    %cst_12 = arith.constant 0.000000e+00 : f32
    %26 = vector.broadcast %cst_12 : f32 to vector<16x1xf32>
    %27 = arith.maximumf %25, %26 : vector<16x1xf32>
    %28 = vector.broadcast %18 : vector<16x1xf32> to vector<16x128xf32>
    %29 = arith.subf %14, %28 : vector<16x128xf32>
    %cst_13 = arith.constant 9.99999996E-13 : f32
    %30 = vector.broadcast %cst_13 : f32 to vector<16x1xf32>
    %31 = arith.addf %27, %30 : vector<16x1xf32>
    %32 = math.rsqrt %31 : vector<16x1xf32>
    %33 = vector.broadcast %32 : vector<16x1xf32> to vector<16x128xf32>
    %34 = arith.mulf %29, %33 : vector<16x128xf32>
    %c0_14 = arith.constant 0 : index
    %c0_15 = arith.constant 0 : index
    %35 = vector.load %arg4[%c0_14, %c0_15] : memref<1x128xf32, #tpu.memory_space<vmem>>, vector<1x128xf32>
    %36 = vector.broadcast %35 : vector<1x128xf32> to vector<16x128xf32>
    %37 = arith.mulf %34, %36 : vector<16x128xf32>
    %c0_16 = arith.constant 0 : index
    %c0_17 = arith.constant 0 : index
    %38 = vector.load %arg5[%c0_16, %c0_17] : memref<1x128xf32, #tpu.memory_space<vmem>>, vector<1x128xf32>
    %39 = vector.broadcast %38 : vector<1x128xf32> to vector<16x128xf32>
    %40 = arith.addf %37, %39 : vector<16x128xf32>
    %c0_18 = arith.constant 0 : index
    %c0_19 = arith.constant 0 : index
    %41 = vector.load %arg6[%c0_18, %c0_19] : memref<16x128xf32, #tpu.memory_space<vmem>>, vector<16x128xf32>
    tpu.vector_store %arg6[%c0_18, %c0_19], %40 {strides = array<i32>} : memref<16x128xf32, #tpu.memory_space<vmem>>, vector<16x128xf32>,
    return
  }
  func.func @transform_0(%arg0: i32) -> (i32, i32) {
    %c0_i32 = arith.constant 0 : i32
    %c0_i32_0 = arith.constant 0 : i32
    return %arg0, %c0_i32 : i32, i32
  }
  func.func @transform_1(%arg0: i32) -> (i32, i32) {
    %c0_i32 = arith.constant 0 : i32
    %c0_i32_0 = arith.constant 0 : i32
    %c0_i32_1 = arith.constant 0 : i32
    return %c0_i32, %c0_i32_0 : i32, i32
  }
  func.func @transform_2(%arg0: i32) -> (i32, i32) {
    %c0_i32 = arith.constant 0 : i32
    %c0_i32_0 = arith.constant 0 : i32
    %c0_i32_1 = arith.constant 0 : i32
    return %c0_i32, %c0_i32_0 : i32, i32
  }
  func.func @transform_3(%arg0: i32) -> (i32, i32) {
    %c0_i32 = arith.constant 0 : i32
    %c0_i32_0 = arith.constant 0 : i32
    %c0_i32_1 = arith.constant 0 : i32
    return %c0_i32, %c0_i32_0 : i32, i32
  }
  func.func @transform_4(%arg0: i32) -> (i32, i32) {
    %c0_i32 = arith.constant 0 : i32
    %c0_i32_0 = arith.constant 0 : i32
    %c0_i32_1 = arith.constant 0 : i32
    return %c0_i32, %c0_i32_0 : i32, i32
  }
  func.func @transform_5(%arg0: i32) -> (i32, i32) {
    %c0_i32 = arith.constant 0 : i32
    %c0_i32_0 = arith.constant 0 : i32
    return %arg0, %c0_i32 : i32, i32
  }
}

module attributes {stable_mosaic.version = 11 : i64} {
  func.func @kernel(%arg0: i32, %arg1: memref<16x128xf32, #tpu.memory_space<vmem>>, %arg2: memref<128x128xbf16, #tpu.memory_space<vmem>>, %arg3: memref<1x128xf32, #tpu.memory_space<vmem>>, %arg4: memref<1x128xf32, #tpu.memory_space<vmem>>, %arg5: memref<1x128xf32, #tpu.memory_space<vmem>>, %arg6: memref<16x128xf32, #tpu.memory_space<vmem>>) attributes {dimension_semantics = [#tpu.dimension_semantics<parallel>], iteration_bounds = array<i64: 1>, scalar_prefetch = 0 : i64, scratch_operands = 0 : i64, tpu.core_type = #tpu.core_type<tc>, window_params = [{transform_indices = @transform_0, window_bounds = array<i64: 16, 128>}, {pipeline_mode = #tpu.pipeline_mode<synchronous>, transform_indices = @transform_1, window_bounds = array<i64: 128, 128>}, {pipeline_mode = #tpu.pipeline_mode<synchronous>, transform_indices = @transform_2, window_bounds = array<i64: 1, 128>}, {pipeline_mode = #tpu.pipeline_mode<synchronous>, transform_indices = @transform_3, window_bounds = array<i64: 1, 128>}, {pipeline_mode = #tpu.pipeline_mode<synchronous>, transform_indices = @transform_4, window_bounds = array<i64: 1, 128>}, {transform_indices = @transform_5, window_bounds = array<i64: 16, 128>}]} {
    %c0 = arith.constant 0 : index
    %c0_0 = arith.constant 0 : index
    %0 = vector.load %arg1[%c0, %c0_0] : memref<16x128xf32, #tpu.memory_space<vmem>>, vector<16x128xf32>
    %1 = arith.truncf %0 : vector<16x128xf32> to vector<16x128xbf16>
    %c0_1 = arith.constant 0 : index
    %c0_2 = arith.constant 0 : index
    %2 = vector.load %arg2[%c0_1, %c0_2] : memref<128x128xbf16, #tpu.memory_space<vmem>>, vector<128x128xbf16>
    %cst = arith.constant dense<0.000000e+00> : vector<16x128xf32>
    %3 = tpu.matmul %1, %2, %cst {dimension_numbers = #tpu.dot_dimension_numbers<[1], [0], [0], [1], [0, 0, 1, 1], [], []>} : vector<16x128xbf16>, vector<128x128xbf16>, vector<16x128xf32> -> vector<16x128xf32>
    %c0_3 = arith.constant 0 : index
    %c0_4 = arith.constant 0 : index
    %4 = vector.load %arg3[%c0_3, %c0_4] : memref<1x128xf32, #tpu.memory_space<vmem>>, vector<1x128xf32>
    %5 = vector.broadcast %4 : vector<1x128xf32> to vector<16x128xf32>
    %6 = arith.addf %3, %5 : vector<16x128xf32>
    %cst_5 = arith.constant 5.000000e-01 : f32
    %7 = vector.broadcast %cst_5 : f32 to vector<16x128xf32>
    %8 = arith.mulf %6, %7 : vector<16x128xf32>
    %cst_6 = arith.constant 0.707106769 : f32
    %9 = vector.broadcast %cst_6 : f32 to vector<16x128xf32>
    %10 = arith.mulf %6, %9 : vector<16x128xf32>
    %11 = math.erf %10 : vector<16x128xf32>
    %cst_7 = arith.constant 1.000000e+00 : f32
    %12 = vector.broadcast %cst_7 : f32 to vector<16x128xf32>
    %13 = arith.addf %12, %11 : vector<16x128xf32>
    %14 = arith.mulf %8, %13 : vector<16x128xf32>
    %cst_8 = arith.constant dense<0.000000e+00> : vector<16xf32>
    %15 = vector.multi_reduction <add>, %14, %cst_8 [1] : vector<16x128xf32> to vector<16xf32>
    %16 = vector.shape_cast %15 : vector<16xf32> to vector<16x1xf32>
    %cst_9 = arith.constant 1.280000e+02 : f32
    %17 = vector.broadcast %cst_9 : f32 to vector<16x1xf32>
    %18 = arith.divf %16, %17 : vector<16x1xf32>
    %19 = arith.mulf %14, %14 : vector<16x128xf32>
    %cst_10 = arith.constant dense<0.000000e+00> : vector<16xf32>
    %20 = vector.multi_reduction <add>, %19, %cst_10 [1] : vector<16x128xf32> to vector<16xf32>
    %21 = vector.shape_cast %20 : vector<16xf32> to vector<16x1xf32>
    %cst_11 = arith.constant 1.280000e+02 : f32
    %22 = vector.broadcast %cst_11 : f32 to vector<16x1xf32>
    %23 = arith.divf %21, %22 : vector<16x1xf32>
    %24 = arith.mulf %18, %18 : vector<16x1xf32>
    %25 = arith.subf %23, %24 : vector<16x1xf32>
    %cst_12 = arith.constant 0.000000e+00 : f32
    %26 = vector.broadcast %cst_12 : f32 to vector<16x1xf32>
    %27 = arith.maximumf %25, %26 : vector<16x1xf32>
    %28 = vector.broadcast %18 : vector<16x1xf32> to vector<16x128xf32>
    %29 = arith.subf %14, %28 : vector<16x128xf32>
    %cst_13 = arith.constant 9.99999996E-13 : f32
    %30 = vector.broadcast %cst_13 : f32 to vector<16x1xf32>
    %31 = arith.addf %27, %30 : vector<16x1xf32>
    %32 = math.rsqrt %31 : vector<16x1xf32>
    %33 = vector.broadcast %32 : vector<16x1xf32> to vector<16x128xf32>
    %34 = arith.mulf %29, %33 : vector<16x128xf32>
    %c0_14 = arith.constant 0 : index
    %c0_15 = arith.constant 0 : index
    %35 = vector.load %arg4[%c0_14, %c0_15] : memref<1x128xf32, #tpu.memory_space<vmem>>, vector<1x128xf32>
    %36 = vector.broadcast %35 : vector<1x128xf32> to vector<16x128xf32>
    %37 = arith.mulf %34, %36 : vector<16x128xf32>
    %c0_16 = arith.constant 0 : index
    %c0_17 = arith.constant 0 : index
    %38 = vector.load %arg5[%c0_16, %c0_17] : memref<1x128xf32, #tpu.memory_space<vmem>>, vector<1x128xf32>
    %39 = vector.broadcast %38 : vector<1x128xf32> to vector<16x128xf32>
    %40 = arith.addf %37, %39 : vector<16x128xf32>
    %c0_18 = arith.constant 0 : index
    %c0_19 = arith.constant 0 : index
    %41 = vector.load %arg6[%c0_18, %c0_19] : memref<16x128xf32, #tpu.memory_space<vmem>>, vector<16x128xf32>
    tpu.vector_store %arg6[%c0_18, %c0_19], %40 {strides = array<i32>} : memref<16x128xf32, #tpu.memory_space<vmem>>, vector<16x128xf32>,
    return
  }
  func.func @transform_0(%arg0: i32) -> (i32, i32) {
    %c0_i32 = arith.constant 0 : i32
    %c0_i32_0 = arith.constant 0 : i32
    return %arg0, %c0_i32 : i32, i32
  }
  func.func @transform_1(%arg0: i32) -> (i32, i32) {
    %c0_i32 = arith.constant 0 : i32
    %c0_i32_0 = arith.constant 0 : i32
    %c0_i32_1 = arith.constant 0 : i32
    return %c0_i32, %c0_i32_0 : i32, i32
  }
  func.func @transform_2(%arg0: i32) -> (i32, i32) {
    %c0_i32 = arith.constant 0 : i32
    %c0_i32_0 = arith.constant 0 : i32
    %c0_i32_1 = arith.constant 0 : i32
    return %c0_i32, %c0_i32_0 : i32, i32
  }
  func.func @transform_3(%arg0: i32) -> (i32, i32) {
    %c0_i32 = arith.constant 0 : i32
    %c0_i32_0 = arith.constant 0 : i32
    %c0_i32_1 = arith.constant 0 : i32
    return %c0_i32, %c0_i32_0 : i32, i32
  }
  func.func @transform_4(%arg0: i32) -> (i32, i32) {
    %c0_i32 = arith.constant 0 : i32
    %c0_i32_0 = arith.constant 0 : i32
    %c0_i32_1 = arith.constant 0 : i32
    return %c0_i32, %c0_i32_0 : i32, i32
  }
  func.func @transform_5(%arg0: i32) -> (i32, i32) {
    %c0_i32 = arith.constant 0 : i32
    %c0_i32_0 = arith.constant 0 : i32
    return %arg0, %c0_i32 : i32, i32
  }
}

</mosaic_0001>

<bundles_post_ra>
// kernel: tpu_custom_call.1
= control target key start
LH: loop header
LB: loop body
LE: loop exit
PB: predicated region body
PF: predicated region fallthrough
CT: control target
= control target key end

     0   :  { %10 = vsyncpa [#allocation3], 0  ;;  %s529_s0 = inlined_call_operand.hbm [shape: f32[16,128], index: 0, kind: input, shape index: {}]   ;;  %s530_s1 = inlined_call_operand.hbm [shape: bf16[128,128], index: 1, kind: input, shape index: {}]   ;;  %s531_s2 = inlined_call_operand.vmem [shape: f32[1,128], index: 2, kind: input, shape index: {}]   ;;  %s532_s3 = inlined_call_operand.vmem [shape: f32[1,128], index: 3, kind: input, shape index: {}]   ;;  %s533_s4 = inlined_call_operand.vmem [shape: f32[1,128], index: 4, kind: input, shape index: {}]   ;;  %s534_s5 = inlined_call_operand.hbm [shape: f32[16,128], index: 5, kind: output, shape index: {}]  }
   0x1   :  { %11 = vsyncpa [#allocation6], 0 }
   0x2   :  { %12 = vsyncpa [#allocation4], 0  ;;  %s17_s20 = sshll.u32 %s529_s0, 4  ;;  %s454_s21 = smov [#allocation2]   ;;  %s18_s20 = int_to_ptr.hbm [resolvable:$true] %s17_s20 }
   0x3   :  { %s19_s22 = sshll.u32 %s454_s21, 4  ;;  %s30_s25 = sshll.u32 %s530_s1, 4  ;;  %s20_s22 = int_to_ptr.vmem [resolvable:$true] %s19_s22  ;;  %s31_s25 = int_to_ptr.hbm [resolvable:$true] %s30_s25 }
   0x4   :  { %s455_s26 = smov 128   ;;  %s456_s27 = smov 8  }
   0x5   :  { %25 = dma.hbm_to_vmem [thread:$0]  %s18_s20, 256, %s20_s22, [#allocation3], %s455_s26, %s455_s26, %s456_s27  }
   0x6   :  { %s457_s28 = smov [#allocation5]   ;;  %s458_s30 = smov 64  }
   0x7   :  { %s32_s29 = sshll.u32 %s457_s28, 4  ;;  %s459_s0 = smov 4   ;;  %s33_s29 = int_to_ptr.vmem [resolvable:$true] %s32_s29 }
   0x8   :  { %38 = dma.hbm_to_vmem [thread:$0]  %s31_s25, 1024, %s33_s29, [#allocation6], %s458_s30, %s458_s30, %s459_s0  }
   0x9   :  { %448 = dma.done.wait [#allocation3], 256  }
   0xa   :  { %449 = vsyncadd [#allocation3], 4294967040 }
   0xb   :  { %450 = dma.done.wait [#allocation6], 1024  }
   0xc   :  { %451 = vsyncadd [#allocation6], 4294966272  ;;  %v354_v0 = vld [vmem:[#allocation5 + $0x38] sm:$0xff]  ;;  %v353_v1 = vld [vmem:[#allocation5 + $0x30] sm:$0xff]  ;;  %s299_s13 = sshll.u32 %s534_s5, 4  ;;  %s300_s13 = int_to_ptr.hbm [resolvable:$true] %s299_s13 }
   0xd   :  { %124 = vmatpush.bf16.msra.mxu0 %v354_v0  ;;  %v352_v2 = vld [vmem:[#allocation5 + $0x28] sm:$0xff]  ;;  %v351_v3 = vld [vmem:[#allocation5 + $0x20] sm:$0xff]  ;;  %v350_v4 = vld [vmem:[#allocation5 + $0x18] sm:$0xff] }
   0xe   :  { %v349_v5 = vld [vmem:[#allocation5 + $0x10] sm:$0xff]  ;;  %v348_v6 = vld [vmem:[#allocation5 + $0x8] sm:$0xff]  ;;  %v347_v7 = vld [vmem:[#allocation5] sm:$0xff] }
   0xf   :  { %v53_v8 = vld [vmem:[#allocation2] sm:$0xff]  ;;  %v54_v9 = vld [vmem:[#allocation2 + $0x8] sm:$0xff] }
  0x10   :  { %v55_v10 = vpack.c.bf16 %v54_v9, %v53_v8  ;;  %v363_v11 = vld [vmem:[%s531_s2] ss:$0 sm:$0xff] }
  0x11   :  { %125 = vmatpush.bf16.msra.mxu0 %v353_v1 }
  0x15   :  { %126 = vmatpush.bf16.msra.mxu0 %v352_v2 }
  0x19   :  { %127 = vmatpush.bf16.msra.mxu0 %v351_v3 }
  0x1d   :  { %128 = vmatpush.bf16.msra.mxu0 %v350_v4 }
  0x21   :  { %129 = vmatpush.bf16.msra.mxu0 %v349_v5 }
  0x25   :  { %130 = vmatpush.bf16.msra.mxu0 %v348_v6 }
  0x29   :  { %131 = vmatpush.bf16.msra.mxu0 %v347_v7 }
  0x2c   :  { %132 = vmatmul.bf16.vlgmr.msra.gmra.mxu0 %v55_v10 }
  0xa9   :  { %v133_v12 = vpop.f32.mrf.mxu0 }
  0xaa   :  { %v504_v13 = vadd.f32 %v363_v11, %v133_v12 }
  0xac   :  { %v140_v14 = vmul.f32 0.70710677, %v504_v13 }
  0xae   :  { %v142_v15 = vmul.f32 %v140_v14, %v140_v14 }
  0xb0   :  { %v143_v16 = vmin.f32 %v142_v15, 16.0 }
  0xb1   :  { %v135_v17 = vpop.f32.mrf.mxu0 }
  0xb2   :  { %v144_v18 = vmul.f32 2.1237322e-06, %v143_v16  ;;  %v155_v19 = vmul.f32 3.8918573e-05, %v143_v16  ;;  %v507_v20 = vadd.f32 %v363_v11, %v135_v17 }
  0xb4   :  { %v145_v21 = vadd.f32 0.00028619796, %v144_v18  ;;  %v156_v22 = vadd.f32 0.001143296, %v155_v19  ;;  %v510_v23 = vmul.f32 0.70710677, %v507_v20 }
  0xb5   :  { %v138_v19 = vmul.f32 0.5, %v504_v13 }
  0xb6   :  { %v146_v24 = vmul.f32 %v145_v21, %v143_v16  ;;  %v157_v25 = vmul.f32 %v156_v22, %v143_v16  ;;  %v182_v26 = vmul.f32 %v510_v23, %v510_v23 }
  0xb8   :  { %v158_v27 = vadd.f32 0.014752088, %v157_v25  ;;  %v147_v28 = vadd.f32 0.0036580483, %v146_v24  ;;  %v183_v29 = vmin.f32 %v182_v26, 16.0 }
  0xba   :  { %v159_v30 = vmul.f32 %v158_v27, %v143_v16  ;;  %v184_v31 = vmul.f32 2.1237322e-06, %v183_v29  ;;  %v195_v32 = vmul.f32 3.8918573e-05, %v183_v29  ;;  %v148_v34 = vmul.f32 %v147_v28, %v143_v16 }
  0xbc   :  { %v160_v33 = vadd.f32 0.112945676, %v159_v30  ;;  %v185_v35 = vadd.f32 0.00028619796, %v184_v31  ;;  %v196_v36 = vadd.f32 0.001143296, %v195_v32 }
  0xbd   :  { %v149_v41 = vadd.f32 0.05243302, %v148_v34  ;;  %v139_v31 = vmul.f32 0.5, %v507_v20  ;;  %v460_v34 = vmov 128.0  }
  0xbe   :  { %v161_v37 = vmul.f32 %v160_v33, %v143_v16  ;;  %v186_v38 = vmul.f32 %v185_v35, %v183_v29  ;;  %v197_v39 = vmul.f32 %v196_v36, %v183_v29 }
  0xbf   :  { %v150_v47 = vmul.f32 %v149_v41, %v143_v16 }
  0xc0   :  { %v162_v40 = vadd.f32 0.4994258, %v161_v37  ;;  %v198_v42 = vadd.f32 0.014752088, %v197_v39  ;;  %v187_v44 = vadd.f32 0.0036580483, %v186_v38 }
  0xc1   :  { %v151_v51 = vadd.f32 0.18741608, %v150_v47 }
  0xc2   :  { %v163_v43 = vmul.f32 %v162_v40, %v143_v16  ;;  %v199_v45 = vmul.f32 %v198_v42, %v183_v29  ;;  %v188_v49 = vmul.f32 %v187_v44, %v183_v29 }
  0xc3   :  { %v152_v56 = vmul.f32 %v151_v51, %v143_v16 }
  0xc4   :  { %v164_v46 = vadd.f32 1.0, %v163_v43  ;;  %v200_v48 = vadd.f32 0.112945676, %v199_v45  ;;  %v189_v53 = vadd.f32 0.05243302, %v188_v49 }
  0xc5   :  { %v153_v62 = vadd.f32 1.1283791, %v152_v56 }
  0xc6   :  { %366 = vrcp.f32 %v164_v46  ;;  %v201_v50 = vmul.f32 %v200_v48, %v183_v29  ;;  %v190_v59 = vmul.f32 %v189_v53, %v183_v29  ;;  %v176_v61 = vand.u32 2147483648, %v164_v46 }
  0xc7   :  { %v174_v0 = vand.u32 2147483647, %v164_v46  ;;  %vm170_vm1 = vweird.f32 %v164_v46  ;;  %v154_v5 = vmul.f32 %v153_v62, %v140_v14 }
  0xc8   :  { %v202_v52 = vadd.f32 0.4994258, %v201_v50  ;;  %v191_v1 = vadd.f32 0.18741608, %v190_v59  ;;  %v177_v3 = vor.u32 1.1754944e-38, %v176_v61 }
  0xc9   :  { %vm175_vm3 = vcmp.eq.f32.partialorder %v174_v0, 8.507059e+37  ;;  %v364_v0 = vld [vmem:[%s532_s3] ss:$0 sm:$0xff]  ;;  %s461_s3 = smov [#allocation7]  }
  0xca   :  { %v203_v54 = vmul.f32 %v202_v52, %v183_v29  ;;  %v192_v8 = vmul.f32 %v191_v1, %v183_v29  ;;  %s297_s10 = sshll.u32 %s461_s3, 4  ;;  %s298_s10 = int_to_ptr.vmem [resolvable:$true] %s297_s10 }
  0xcc   :  { %v367_v55 = vpop.eup %366  ;;  %v204_v58 = vadd.f32 1.0, %v203_v54  ;;  %v193_v16 = vadd.f32 1.1283791, %v192_v8 }
  0xcd   :  { %v166_v57 = vmul.f32 %v367_v55, %v164_v46  ;;  %vm171_vm0 = vweird.f32 %v367_v55 }
  0xce   :  { %368 = vrcp.f32 %v204_v58  ;;  %vm172_vm2 = vmor %vm170_vm1, %vm171_vm0  ;;  %v216_v12 = vand.u32 2147483648, %v204_v58  ;;  %v214_v18 = vand.u32 2147483647, %v204_v58  ;;  %vm210_vm5 = vweird.f32 %v204_v58 }
  0xcf   :  { %v167_v60 = vsub.f32 1.0, %v166_v57  ;;  %v194_v25 = vmul.f32 %v193_v16, %v510_v23  ;;  %370 = vrcp.f32 %v460_v34 }
  0xd0   :  { %v217_v14 = vor.u32 1.1754944e-38, %v216_v12  ;;  %vm215_vm7 = vcmp.eq.f32.partialorder %v214_v18, 8.507059e+37 }
  0xd1   :  { %v168_v63 = vmul.f32 %v367_v55, %v167_v60 }
  0xd3   :  { %v169_v2 = vadd.f32 %v367_v55, %v168_v63 }
  0xd4   :  { %v369_v4 = vpop.eup %368 }
  0xd5   :  { %v173_v6 = vsel %vm172_vm2, %v367_v55, %v169_v2  ;;  %v206_v9 = vmul.f32 %v369_v4, %v204_v58  ;;  %vm211_vm4 = vweird.f32 %v369_v4  ;;  %v371_v35 = vpop.eup %370 }
  0xd6   :  { %v178_v7 = vsel %vm175_vm3, %v177_v3, %v173_v6  ;;  %vm212_vm6 = vmor %vm210_vm5, %vm211_vm4  ;;  %v231_v36 = vmul.f32 128.0, %v371_v35  ;;  %vm235_vm8 = vweird.f32 %v371_v35 }
  0xd7   :  { %v179_v10 = vmul.f32 %v178_v7, %v154_v5  ;;  %v207_v11 = vsub.f32 1.0, %v206_v9 }
  0xd8   :  { %v232_v23 = vsub.f32 1.0, %v231_v36 }
  0xd9   :  { %v345_v15 = vclamps-f32 %v179_v10, 1.0  ;;  %v208_v17 = vmul.f32 %v369_v4, %v207_v11 }
  0xda   :  { %v233_v37 = vmul.f32 %v371_v35, %v232_v23 }
  0xdb   :  { %v222_v21 = vadd.f32 1.0, %v345_v15  ;;  %v209_v22 = vadd.f32 %v369_v4, %v208_v17 }
  0xdc   :  { %v234_v38 = vadd.f32 %v371_v35, %v233_v37 }
  0xdd   :  { %v224_v24 = vmul.f32 %v222_v21, %v138_v19  ;;  %v213_v26 = vsel %vm212_vm6, %v369_v4, %v209_v22  ;;  %v365_v4 = vld [vmem:[%s533_s4] ss:$0 sm:$0xff] }
  0xde   :  { %v218_v27 = vsel %vm215_vm7, %v217_v14, %v213_v26  ;;  %v236_v39 = vsel %vm235_vm8, %v371_v35, %v234_v38 }
  0xdf   :  { %226 = vadd.xlane.f32.xlu0 %v224_v24  ;;  %v239_v28 = vmul.f32 %v224_v24, %v224_v24  ;;  %v219_v29 = vmul.f32 %v218_v27, %v194_v25 }
  0xe1   :  { %241 = vadd.xlane.f32.xlu1 %v239_v28  ;;  %v346_v30 = vclamps-f32 %v219_v29, 1.0 }
  0xe3   :  { %v223_v32 = vadd.f32 1.0, %v346_v30 }
  0xe5   :  { %v225_v13 = vmul.f32 %v223_v32, %v139_v31 }
  0xe7   :  { %228 = vadd.xlane.f32.xlu0 %v225_v13  ;;  %v240_v33 = vmul.f32 %v225_v13, %v225_v13 }
  0xe9   :  { %243 = vadd.xlane.f32.xlu1 %v240_v33 }
 0x152   :  { %v227_v40 = vpop.xlane.xlu0 %226 }
 0x153   :  { %v237_v41 = vmul.f32 %v236_v39, %v227_v40 }
 0x154   :  { %v242_v42 = vpop.xlane.xlu1 %241 }
 0x155   :  { %v247_v43 = vmul.f32 %v237_v41, %v237_v41  ;;  %v245_v44 = vmul.f32 %v242_v42, %v236_v39  ;;  %v253_v62 = vsub.f32 %v224_v24, %v237_v41 }
 0x157   :  { %v249_v20 = vsub.f32 %v245_v44, %v247_v43 }
 0x159   :  { %v251_v45 = vmax.f32 %v249_v20, 0.0 }
 0x15a   :  { %v229_v47 = vpop.xlane.xlu0 %228 }
 0x15b   :  { %v255_v46 = vadd.f32 1e-12, %v251_v45  ;;  %v238_v48 = vmul.f32 %v236_v39, %v229_v47 }
 0x15c   :  { %v244_v49 = vpop.xlane.xlu1 %243 }
 0x15d   :  { %372 = vrsqrt.f32 %v255_v46  ;;  %v248_v50 = vmul.f32 %v238_v48, %v238_v48  ;;  %v246_v51 = vmul.f32 %v244_v49, %v236_v39  ;;  %vm263_vm10 = vweird.f32 %v255_v46 }
 0x15e   :  { %v254_v10 = vsub.f32 %v225_v13, %v238_v48 }
 0x15f   :  { %v250_v52 = vsub.f32 %v246_v51, %v248_v50 }
 0x161   :  { %v252_v53 = vmax.f32 %v250_v52, 0.0 }
 0x163   :  { %v373_v54 = vpop.eup %372  ;;  %v256_v56 = vadd.f32 1e-12, %v252_v53 }
 0x164   :  { %v258_v55 = vmul.f32 %v373_v54, %v255_v46  ;;  %vm264_vm9 = vweird.f32 %v373_v54 }
 0x165   :  { %374 = vrsqrt.f32 %v256_v56  ;;  %vm265_vm11 = vmor %vm263_vm10, %vm264_vm9  ;;  %vm273_vm13 = vweird.f32 %v256_v56 }
 0x166   :  { %v259_v57 = vmul.f32 %v373_v54, %v258_v55 }
 0x168   :  { %v260_v58 = vmul.f32 0.5, %v259_v57 }
 0x16a   :  { %v261_v59 = vsub.f32 1.5, %v260_v58 }
 0x16b   :  { %v375_v60 = vpop.eup %374 }
 0x16c   :  { %v262_v61 = vmul.f32 %v373_v54, %v261_v59  ;;  %v268_v63 = vmul.f32 %v375_v60, %v256_v56  ;;  %vm274_vm12 = vweird.f32 %v375_v60 }
 0x16d   :  { %vm275_vm14 = vmor %vm273_vm13, %vm274_vm12 }
 0x16e   :  { %v266_v1 = vsel %vm265_vm11, %v373_v54, %v262_v61  ;;  %v269_v2 = vmul.f32 %v375_v60, %v268_v63 }
 0x16f   :  { %v277_v3 = vmul.f32 %v266_v1, %v253_v62 }
 0x170   :  { %v270_v5 = vmul.f32 0.5, %v269_v2 }
 0x171   :  { %v283_v6 = vmul.f32 %v364_v0, %v277_v3 }
 0x172   :  { %v271_v7 = vsub.f32 1.5, %v270_v5 }
 0x173   :  { %v289_v8 = vadd.f32 %v365_v4, %v283_v6 }
 0x174   :  { %v272_v9 = vmul.f32 %v375_v60, %v271_v7 }
 0x175   :  { %291 = vst [vmem:[#allocation7] sm:$0xff] %v289_v8 }
 0x176   :  { %v276_v11 = vsel %vm275_vm14, %v375_v60, %v272_v9 }
 0x177   :  { %v278_v12 = vmul.f32 %v276_v11, %v254_v10 }
 0x179   :  { %v284_v15 = vmul.f32 %v364_v0, %v278_v12 }
 0x17b   :  { %v290_v16 = vadd.f32 %v365_v4, %v284_v15 }
 0x17d   :  { %292 = vst [vmem:[#allocation7 + $0x8] sm:$0xff] %v290_v16 }
 0x17e   :  { %305 = dma.vmem_to_hbm [thread:$0]  %s298_s10, 256, %s300_s13, [#allocation4], %s455_s26, %s455_s26, %s456_s27  }
 0x17f   :  { %452 = dma.done.wait [#allocation4], 256  }
 0x180   :  { %453 = vsyncadd [#allocation4], 4294967040 }
 0x181   :  { %310 = vsyncpa [#allocation3], 1 }
 0x182   :  { %311 = vsyncpa [#allocation6], 1 }
 0x183   :  { %312 = vsyncpa [#allocation4], 1 }

// kernel: tpu_custom_call.1
= control target key start
LH: loop header
LB: loop body
LE: loop exit
PB: predicated region body
PF: predicated region fallthrough
CT: control target
= control target key end

     0   :  { %10 = vsyncpa [#allocation3], 0  ;;  %s529_s0 = inlined_call_operand.hbm [shape: f32[16,128], index: 0, kind: input, shape index: {}]   ;;  %s530_s1 = inlined_call_operand.hbm [shape: bf16[128,128], index: 1, kind: input, shape index: {}]   ;;  %s531_s2 = inlined_call_operand.vmem [shape: f32[1,128], index: 2, kind: input, shape index: {}]   ;;  %s532_s3 = inlined_call_operand.vmem [shape: f32[1,128], index: 3, kind: input, shape index: {}]   ;;  %s533_s4 = inlined_call_operand.vmem [shape: f32[1,128], index: 4, kind: input, shape index: {}]   ;;  %s534_s5 = inlined_call_operand.hbm [shape: f32[16,128], index: 5, kind: output, shape index: {}]  }
   0x1   :  { %11 = vsyncpa [#allocation6], 0 }
   0x2   :  { %12 = vsyncpa [#allocation4], 0  ;;  %s17_s20 = sshll.u32 %s529_s0, 4  ;;  %s454_s21 = smov [#allocation2]   ;;  %s18_s20 = int_to_ptr.hbm [resolvable:$true] %s17_s20 }
   0x3   :  { %s19_s22 = sshll.u32 %s454_s21, 4  ;;  %s30_s25 = sshll.u32 %s530_s1, 4  ;;  %s20_s22 = int_to_ptr.vmem [resolvable:$true] %s19_s22  ;;  %s31_s25 = int_to_ptr.hbm [resolvable:$true] %s30_s25 }
   0x4   :  { %s455_s26 = smov 128   ;;  %s456_s27 = smov 8  }
   0x5   :  { %25 = dma.hbm_to_vmem [thread:$0]  %s18_s20, 256, %s20_s22, [#allocation3], %s455_s26, %s455_s26, %s456_s27  }
   0x6   :  { %s457_s28 = smov [#allocation5]   ;;  %s458_s30 = smov 64  }
   0x7   :  { %s32_s29 = sshll.u32 %s457_s28, 4  ;;  %s459_s0 = smov 4   ;;  %s33_s29 = int_to_ptr.vmem [resolvable:$true] %s32_s29 }
   0x8   :  { %38 = dma.hbm_to_vmem [thread:$0]  %s31_s25, 1024, %s33_s29, [#allocation6], %s458_s30, %s458_s30, %s459_s0  }
   0x9   :  { %448 = dma.done.wait [#allocation3], 256  }
   0xa   :  { %449 = vsyncadd [#allocation3], 4294967040 }
   0xb   :  { %450 = dma.done.wait [#allocation6], 1024  }
   0xc   :  { %451 = vsyncadd [#allocation6], 4294966272  ;;  %v354_v0 = vld [vmem:[#allocation5 + $0x38] sm:$0xff]  ;;  %v353_v1 = vld [vmem:[#allocation5 + $0x30] sm:$0xff]  ;;  %s299_s13 = sshll.u32 %s534_s5, 4  ;;  %s300_s13 = int_to_ptr.hbm [resolvable:$true] %s299_s13 }
   0xd   :  { %124 = vmatpush.bf16.msra.mxu0 %v354_v0  ;;  %v352_v2 = vld [vmem:[#allocation5 + $0x28] sm:$0xff]  ;;  %v351_v3 = vld [vmem:[#allocation5 + $0x20] sm:$0xff]  ;;  %v350_v4 = vld [vmem:[#allocation5 + $0x18] sm:$0xff] }
   0xe   :  { %v349_v5 = vld [vmem:[#allocation5 + $0x10] sm:$0xff]  ;;  %v348_v6 = vld [vmem:[#allocation5 + $0x8] sm:$0xff]  ;;  %v347_v7 = vld [vmem:[#allocation5] sm:$0xff] }
   0xf   :  { %v53_v8 = vld [vmem:[#allocation2] sm:$0xff]  ;;  %v54_v9 = vld [vmem:[#allocation2 + $0x8] sm:$0xff] }
  0x10   :  { %v55_v10 = vpack.c.bf16 %v54_v9, %v53_v8  ;;  %v363_v11 = vld [vmem:[%s531_s2] ss:$0 sm:$0xff] }
  0x11   :  { %125 = vmatpush.bf16.msra.mxu0 %v353_v1 }
  0x15   :  { %126 = vmatpush.bf16.msra.mxu0 %v352_v2 }
  0x19   :  { %127 = vmatpush.bf16.msra.mxu0 %v351_v3 }
  0x1d   :  { %128 = vmatpush.bf16.msra.mxu0 %v350_v4 }
  0x21   :  { %129 = vmatpush.bf16.msra.mxu0 %v349_v5 }
  0x25   :  { %130 = vmatpush.bf16.msra.mxu0 %v348_v6 }
  0x29   :  { %131 = vmatpush.bf16.msra.mxu0 %v347_v7 }
  0x2c   :  { %132 = vmatmul.bf16.vlgmr.msra.gmra.mxu0 %v55_v10 }
  0xa9   :  { %v133_v12 = vpop.f32.mrf.mxu0 }
  0xaa   :  { %v504_v13 = vadd.f32 %v363_v11, %v133_v12 }
  0xac   :  { %v140_v14 = vmul.f32 0.70710677, %v504_v13 }
  0xae   :  { %v142_v15 = vmul.f32 %v140_v14, %v140_v14 }
  0xb0   :  { %v143_v16 = vmin.f32 %v142_v15, 16.0 }
  0xb1   :  { %v135_v17 = vpop.f32.mrf.mxu0 }
  0xb2   :  { %v144_v18 = vmul.f32 2.1237322e-06, %v143_v16  ;;  %v155_v19 = vmul.f32 3.8918573e-05, %v143_v16  ;;  %v507_v20 = vadd.f32 %v363_v11, %v135_v17 }
  0xb4   :  { %v145_v21 = vadd.f32 0.00028619796, %v144_v18  ;;  %v156_v22 = vadd.f32 0.001143296, %v155_v19  ;;  %v510_v23 = vmul.f32 0.70710677, %v507_v20 }
  0xb5   :  { %v138_v19 = vmul.f32 0.5, %v504_v13 }
  0xb6   :  { %v146_v24 = vmul.f32 %v145_v21, %v143_v16  ;;  %v157_v25 = vmul.f32 %v156_v22, %v143_v16  ;;  %v182_v26 = vmul.f32 %v510_v23, %v510_v23 }
  0xb8   :  { %v158_v27 = vadd.f32 0.014752088, %v157_v25  ;;  %v147_v28 = vadd.f32 0.0036580483, %v146_v24  ;;  %v183_v29 = vmin.f32 %v182_v26, 16.0 }
  0xba   :  { %v159_v30 = vmul.f32 %v158_v27, %v143_v16  ;;  %v184_v31 = vmul.f32 2.1237322e-06, %v183_v29  ;;  %v195_v32 = vmul.f32 3.8918573e-05, %v183_v29  ;;  %v148_v34 = vmul.f32 %v147_v28, %v143_v16 }
  0xbc   :  { %v160_v33 = vadd.f32 0.112945676, %v159_v30  ;;  %v185_v35 = vadd.f32 0.00028619796, %v184_v31  ;;  %v196_v36 = vadd.f32 0.001143296, %v195_v32 }
  0xbd   :  { %v149_v41 = vadd.f32 0.05243302, %v148_v34  ;;  %v139_v31 = vmul.f32 0.5, %v507_v20  ;;  %v460_v34 = vmov 128.0  }
  0xbe   :  { %v161_v37 = vmul.f32 %v160_v33, %v143_v16  ;;  %v186_v38 = vmul.f32 %v185_v35, %v183_v29  ;;  %v197_v39 = vmul.f32 %v196_v36, %v183_v29 }
  0xbf   :  { %v150_v47 = vmul.f32 %v149_v41, %v143_v16 }
  0xc0   :  { %v162_v40 = vadd.f32 0.4994258, %v161_v37  ;;  %v198_v42 = vadd.f32 0.014752088, %v197_v39  ;;  %v187_v44 = vadd.f32 0.0036580483, %v186_v38 }
  0xc1   :  { %v151_v51 = vadd.f32 0.18741608, %v150_v47 }
  0xc2   :  { %v163_v43 = vmul.f32 %v162_v40, %v143_v16  ;;  %v199_v45 = vmul.f32 %v198_v42, %v183_v29  ;;  %v188_v49 = vmul.f32 %v187_v44, %v183_v29 }
  0xc3   :  { %v152_v56 = vmul.f32 %v151_v51, %v143_v16 }
  0xc4   :  { %v164_v46 = vadd.f32 1.0, %v163_v43  ;;  %v200_v48 = vadd.f32 0.112945676, %v199_v45  ;;  %v189_v53 = vadd.f32 0.05243302, %v188_v49 }
  0xc5   :  { %v153_v62 = vadd.f32 1.1283791, %v152_v56 }
  0xc6   :  { %366 = vrcp.f32 %v164_v46  ;;  %v201_v50 = vmul.f32 %v200_v48, %v183_v29  ;;  %v190_v59 = vmul.f32 %v189_v53, %v183_v29  ;;  %v176_v61 = vand.u32 2147483648, %v164_v46 }
  0xc7   :  { %v174_v0 = vand.u32 2147483647, %v164_v46  ;;  %vm170_vm1 = vweird.f32 %v164_v46  ;;  %v154_v5 = vmul.f32 %v153_v62, %v140_v14 }
  0xc8   :  { %v202_v52 = vadd.f32 0.4994258, %v201_v50  ;;  %v191_v1 = vadd.f32 0.18741608, %v190_v59  ;;  %v177_v3 = vor.u32 1.1754944e-38, %v176_v61 }
  0xc9   :  { %vm175_vm3 = vcmp.eq.f32.partialorder %v174_v0, 8.507059e+37  ;;  %v364_v0 = vld [vmem:[%s532_s3] ss:$0 sm:$0xff]  ;;  %s461_s3 = smov [#allocation7]  }
  0xca   :  { %v203_v54 = vmul.f32 %v202_v52, %v183_v29  ;;  %v192_v8 = vmul.f32 %v191_v1, %v183_v29  ;;  %s297_s10 = sshll.u32 %s461_s3, 4  ;;  %s298_s10 = int_to_ptr.vmem [resolvable:$true] %s297_s10 }
  0xcc   :  { %v367_v55 = vpop.eup %366  ;;  %v204_v58 = vadd.f32 1.0, %v203_v54  ;;  %v193_v16 = vadd.f32 1.1283791, %v192_v8 }
  0xcd   :  { %v166_v57 = vmul.f32 %v367_v55, %v164_v46  ;;  %vm171_vm0 = vweird.f32 %v367_v55 }
  0xce   :  { %368 = vrcp.f32 %v204_v58  ;;  %vm172_vm2 = vmor %vm170_vm1, %vm171_vm0  ;;  %v216_v12 = vand.u32 2147483648, %v204_v58  ;;  %v214_v18 = vand.u32 2147483647, %v204_v58  ;;  %vm210_vm5 = vweird.f32 %v204_v58 }
  0xcf   :  { %v167_v60 = vsub.f32 1.0, %v166_v57  ;;  %v194_v25 = vmul.f32 %v193_v16, %v510_v23  ;;  %370 = vrcp.f32 %v460_v34 }
  0xd0   :  { %v217_v14 = vor.u32 1.1754944e-38, %v216_v12  ;;  %vm215_vm7 = vcmp.eq.f32.partialorder %v214_v18, 8.507059e+37 }
  0xd1   :  { %v168_v63 = vmul.f32 %v367_v55, %v167_v60 }
  0xd3   :  { %v169_v2 = vadd.f32 %v367_v55, %v168_v63 }
  0xd4   :  { %v369_v4 = vpop.eup %368 }
  0xd5   :  { %v173_v6 = vsel %vm172_vm2, %v367_v55, %v169_v2  ;;  %v206_v9 = vmul.f32 %v369_v4, %v204_v58  ;;  %vm211_vm4 = vweird.f32 %v369_v4  ;;  %v371_v35 = vpop.eup %370 }
  0xd6   :  { %v178_v7 = vsel %vm175_vm3, %v177_v3, %v173_v6  ;;  %vm212_vm6 = vmor %vm210_vm5, %vm211_vm4  ;;  %v231_v36 = vmul.f32 128.0, %v371_v35  ;;  %vm235_vm8 = vweird.f32 %v371_v35 }
  0xd7   :  { %v179_v10 = vmul.f32 %v178_v7, %v154_v5  ;;  %v207_v11 = vsub.f32 1.0, %v206_v9 }
  0xd8   :  { %v232_v23 = vsub.f32 1.0, %v231_v36 }
  0xd9   :  { %v345_v15 = vclamps-f32 %v179_v10, 1.0  ;;  %v208_v17 = vmul.f32 %v369_v4, %v207_v11 }
  0xda   :  { %v233_v37 = vmul.f32 %v371_v35, %v232_v23 }
  0xdb   :  { %v222_v21 = vadd.f32 1.0, %v345_v15  ;;  %v209_v22 = vadd.f32 %v369_v4, %v208_v17 }
  0xdc   :  { %v234_v38 = vadd.f32 %v371_v35, %v233_v37 }
  0xdd   :  { %v224_v24 = vmul.f32 %v222_v21, %v138_v19  ;;  %v213_v26 = vsel %vm212_vm6, %v369_v4, %v209_v22  ;;  %v365_v4 = vld [vmem:[%s533_s4] ss:$0 sm:$0xff] }
  0xde   :  { %v218_v27 = vsel %vm215_vm7, %v217_v14, %v213_v26  ;;  %v236_v39 = vsel %vm235_vm8, %v371_v35, %v234_v38 }
  0xdf   :  { %226 = vadd.xlane.f32.xlu0 %v224_v24  ;;  %v239_v28 = vmul.f32 %v224_v24, %v224_v24  ;;  %v219_v29 = vmul.f32 %v218_v27, %v194_v25 }
  0xe1   :  { %241 = vadd.xlane.f32.xlu1 %v239_v28  ;;  %v346_v30 = vclamps-f32 %v219_v29, 1.0 }
  0xe3   :  { %v223_v32 = vadd.f32 1.0, %v346_v30 }
  0xe5   :  { %v225_v13 = vmul.f32 %v223_v32, %v139_v31 }
  0xe7   :  { %228 = vadd.xlane.f32.xlu0 %v225_v13  ;;  %v240_v33 = vmul.f32 %v225_v13, %v225_v13 }
  0xe9   :  { %243 = vadd.xlane.f32.xlu1 %v240_v33 }
 0x152   :  { %v227_v40 = vpop.xlane.xlu0 %226 }
 0x153   :  { %v237_v41 = vmul.f32 %v236_v39, %v227_v40 }
 0x154   :  { %v242_v42 = vpop.xlane.xlu1 %241 }
 0x155   :  { %v247_v43 = vmul.f32 %v237_v41, %v237_v41  ;;  %v245_v44 = vmul.f32 %v242_v42, %v236_v39  ;;  %v253_v62 = vsub.f32 %v224_v24, %v237_v41 }
 0x157   :  { %v249_v20 = vsub.f32 %v245_v44, %v247_v43 }
 0x159   :  { %v251_v45 = vmax.f32 %v249_v20, 0.0 }
 0x15a   :  { %v229_v47 = vpop.xlane.xlu0 %228 }
 0x15b   :  { %v255_v46 = vadd.f32 1e-12, %v251_v45  ;;  %v238_v48 = vmul.f32 %v236_v39, %v229_v47 }
 0x15c   :  { %v244_v49 = vpop.xlane.xlu1 %243 }
 0x15d   :  { %372 = vrsqrt.f32 %v255_v46  ;;  %v248_v50 = vmul.f32 %v238_v48, %v238_v48  ;;  %v246_v51 = vmul.f32 %v244_v49, %v236_v39  ;;  %vm263_vm10 = vweird.f32 %v255_v46 }
 0x15e   :  { %v254_v10 = vsub.f32 %v225_v13, %v238_v48 }
 0x15f   :  { %v250_v52 = vsub.f32 %v246_v51, %v248_v50 }
 0x161   :  { %v252_v53 = vmax.f32 %v250_v52, 0.0 }
 0x163   :  { %v373_v54 = vpop.eup %372  ;;  %v256_v56 = vadd.f32 1e-12, %v252_v53 }
 0x164   :  { %v258_v55 = vmul.f32 %v373_v54, %v255_v46  ;;  %vm264_vm9 = vweird.f32 %v373_v54 }
 0x165   :  { %374 = vrsqrt.f32 %v256_v56  ;;  %vm265_vm11 = vmor %vm263_vm10, %vm264_vm9  ;;  %vm273_vm13 = vweird.f32 %v256_v56 }
 0x166   :  { %v259_v57 = vmul.f32 %v373_v54, %v258_v55 }
 0x168   :  { %v260_v58 = vmul.f32 0.5, %v259_v57 }
 0x16a   :  { %v261_v59 = vsub.f32 1.5, %v260_v58 }
 0x16b   :  { %v375_v60 = vpop.eup %374 }
 0x16c   :  { %v262_v61 = vmul.f32 %v373_v54, %v261_v59  ;;  %v268_v63 = vmul.f32 %v375_v60, %v256_v56  ;;  %vm274_vm12 = vweird.f32 %v375_v60 }
 0x16d   :  { %vm275_vm14 = vmor %vm273_vm13, %vm274_vm12 }
 0x16e   :  { %v266_v1 = vsel %vm265_vm11, %v373_v54, %v262_v61  ;;  %v269_v2 = vmul.f32 %v375_v60, %v268_v63 }
 0x16f   :  { %v277_v3 = vmul.f32 %v266_v1, %v253_v62 }
 0x170   :  { %v270_v5 = vmul.f32 0.5, %v269_v2 }
 0x171   :  { %v283_v6 = vmul.f32 %v364_v0, %v277_v3 }
 0x172   :  { %v271_v7 = vsub.f32 1.5, %v270_v5 }
 0x173   :  { %v289_v8 = vadd.f32 %v365_v4, %v283_v6 }
 0x174   :  { %v272_v9 = vmul.f32 %v375_v60, %v271_v7 }
 0x175   :  { %291 = vst [vmem:[#allocation7] sm:$0xff] %v289_v8 }
 0x176   :  { %v276_v11 = vsel %vm275_vm14, %v375_v60, %v272_v9 }
 0x177   :  { %v278_v12 = vmul.f32 %v276_v11, %v254_v10 }
 0x179   :  { %v284_v15 = vmul.f32 %v364_v0, %v278_v12 }
 0x17b   :  { %v290_v16 = vadd.f32 %v365_v4, %v284_v15 }
 0x17d   :  { %292 = vst [vmem:[#allocation7 + $0x8] sm:$0xff] %v290_v16 }
 0x17e   :  { %305 = dma.vmem_to_hbm [thread:$0]  %s298_s10, 256, %s300_s13, [#allocation4], %s455_s26, %s455_s26, %s456_s27  }
 0x17f   :  { %452 = dma.done.wait [#allocation4], 256  }
 0x180   :  { %453 = vsyncadd [#allocation4], 4294967040 }
 0x181   :  { %310 = vsyncpa [#allocation3], 1 }
 0x182   :  { %311 = vsyncpa [#allocation6], 1 }
 0x183   :  { %312 = vsyncpa [#allocation4], 1 }

</bundles_post_ra>
